<compile_context>
chip_gen: v6e
topology: v6e:2x2x1
jax: 0.10.0
libtpu: 0.0.40
codegen_flags: <defaults>
</compile_context>

<pallas_src>
import jax
import jax.numpy as jnp
from jax.experimental import pallas as pl
from jax.experimental.pallas import tpu as pltpu

B = 8
C, H_IMG, W_IMG = 3, 28, 28
D_IN = C * H_IMG * W_IMG          # 2352 (= 18*128 + 48; K tail is masked by Mosaic)
HIDDEN = 100
D_OUT = 2


def _mlp_softmax_kernel(x_ref, w1_ref, b1_ref, w2_ref, b2_ref,
                        probs_ref, logits_ref):
    # First matmul on the MXU: bf16 operands, f32 accumulation.
    x_bf16 = x_ref[...].astype(jnp.bfloat16)                     # (B, D_IN)
    h = jnp.dot(x_bf16, w1_ref[...],
                preferred_element_type=jnp.float32)              # (B, HIDDEN) f32
    h = jnp.maximum(h + b1_ref[...], 0.0)                        # bias + ReLU, f32

    logits = jnp.dot(h, w2_ref[...],
                     preferred_element_type=jnp.float32) + b2_ref[...]  # (B, D_OUT)

    # Numerically stable softmax over axis=1, f32; reciprocal on the EUP slot.
    m = jnp.max(logits, axis=1, keepdims=True)
    e = jnp.exp(logits - m)
    denom = jnp.sum(e, axis=1, keepdims=True)
    probs = e * pl.reciprocal(denom, approx=True)

    probs_ref[...] = probs
    logits_ref[...] = logits


def _vmem_spec():
    return pl.BlockSpec(memory_space=pltpu.MemorySpace.VMEM)


def sum_discriminator_forward(input_feature, alpha, w1_bf16, b1, w2, b2):
    """Forward pass of the mnist/mnistm discriminator branch.

    input_feature: (B, 3, 28, 28) f32.
    alpha only affects ReverseLayerF's backward pass (gradient reversal); the
    forward pass is identity w.r.t. alpha.
    w1_bf16: (D_IN, HIDDEN) bf16 -- persisted once at param-init time (== torch W1.T).
    b1: (1, HIDDEN) f32 (reshape torch's (HIDDEN,) bias), w2: (HIDDEN, D_OUT) f32,
    b2: (1, D_OUT) f32.
    """
    del alpha  # gradient reversal has no forward effect

    # Flatten NCHW row-major == torch .view(B, -1).  No padding, no casting here.
    flat = input_feature.reshape(input_feature.shape[0], -1)     # (B, D_IN) f32
    bsz = flat.shape[0]

    cost = pl.CostEstimate(
        flops=2 * bsz * D_IN * HIDDEN + 2 * bsz * HIDDEN * D_OUT,
        transcendentals=bsz * (D_OUT + 1),
        bytes_accessed=(D_IN * HIDDEN * 2          # W1 bf16
                        + bsz * D_IN * 4           # flattened input f32
                        + HIDDEN * 4 + HIDDEN * D_OUT * 4 + D_OUT * 4  # b1, w2, b2
                        + 2 * bsz * D_OUT * 4),    # probs + logits
    )

    probs, logits = pl.pallas_call(
        _mlp_softmax_kernel,
        out_shape=(jax.ShapeDtypeStruct((bsz, D_OUT), jnp.float32),
                   jax.ShapeDtypeStruct((bsz, D_OUT), jnp.float32)),
        in_specs=[_vmem_spec() for _ in range(5)],
        out_specs=(_vmem_spec(), _vmem_spec()),
        cost_estimate=cost,
    )(flat, w1_bf16, b1, w2, b2)

    return probs, logits


def _reference(input_feature, w1_bf16, b1, w2, b2):
    # Matches the kernel's bf16 first-matmul operands so the comparison is tight.
    flat = input_feature.reshape(input_feature.shape[0], -1)
    h = jnp.dot(flat.astype(jnp.bfloat16), w1_bf16,
                preferred_element_type=jnp.float32) + b1
    h = jnp.maximum(h, 0.0)
    logits = h @ w2 + b2
    return jax.nn.softmax(logits, axis=1), logits


if __name__ == "__main__":
    key = jax.random.PRNGKey(0)
    k_x, k_w1, k_b1, k_w2, k_b2 = jax.random.split(key, 5)

    # Synthetic parameters with nn.Linear(2352,100) / nn.Linear(100,2) shapes,
    # stored as (in, out) so the kernel computes x @ W (== torch x @ W.T).
    w1 = jax.random.normal(k_w1, (D_IN, HIDDEN), jnp.float32) * 0.02
    b1 = jax.random.normal(k_b1, (1, HIDDEN), jnp.float32) * 0.01
    w2 = jax.random.normal(k_w2, (HIDDEN, D_OUT), jnp.float32) * 0.02
    b2 = jax.random.normal(k_b2, (1, D_OUT), jnp.float32) * 0.01

    # One-time bf16 persistence of W1 (done at "param init", not per call).
    w1_bf16 = w1.astype(jnp.bfloat16)

    x = jax.random.normal(k_x, (B, C, H_IMG, W_IMG), jnp.float32)
    alpha = 1.0

    fwd = jax.jit(sum_discriminator_forward)
    probs, logits = fwd(x, alpha, w1_bf16, b1, w2, b2)
    probs = jax.block_until_ready(probs)
    logits = jax.block_until_ready(logits)

    ref_probs, ref_logits = _reference(x, w1_bf16, b1, w2, b2)
    assert probs.shape == (B, D_OUT) and logits.shape == (B, D_OUT)
    assert jnp.allclose(logits, ref_logits, atol=2e-3, rtol=2e-3)
    assert jnp.allclose(probs, ref_probs, atol=2e-3, rtol=5e-3)
    assert jnp.allclose(jnp.sum(probs, axis=1), 1.0, atol=2e-3)

    print("KERNEL_OK")
</pallas_src>

<mosaic_0001>
module attributes {stable_mosaic.version = 11 : i64} {
  func.func @_mlp_softmax_kernel(%arg0: memref<8x2352xf32, #tpu.memory_space<vmem>>, %arg1: memref<2352x100xbf16, #tpu.memory_space<vmem>>, %arg2: memref<1x100xf32, #tpu.memory_space<vmem>>, %arg3: memref<100x2xf32, #tpu.memory_space<vmem>>, %arg4: memref<1x2xf32, #tpu.memory_space<vmem>>, %arg5: memref<8x2xf32, #tpu.memory_space<vmem>>, %arg6: memref<8x2xf32, #tpu.memory_space<vmem>>) attributes {dimension_semantics = [], scalar_prefetch = 0 : i64, scratch_operands = 0 : i64, tpu.core_type = #tpu.core_type<tc>} {
    %c0 = arith.constant 0 : index
    %c0_0 = arith.constant 0 : index
    %0 = vector.load %arg0[%c0, %c0_0] : memref<8x2352xf32, #tpu.memory_space<vmem>>, vector<8x2352xf32>
    %1 = arith.truncf %0 : vector<8x2352xf32> to vector<8x2352xbf16>
    %c0_1 = arith.constant 0 : index
    %c0_2 = arith.constant 0 : index
    %2 = vector.load %arg1[%c0_1, %c0_2] : memref<2352x100xbf16, #tpu.memory_space<vmem>>, vector<2352x100xbf16>
    %cst = arith.constant dense<0.000000e+00> : vector<8x100xf32>
    %3 = tpu.matmul %1, %2, %cst {dimension_numbers = #tpu.dot_dimension_numbers<[1], [0], [0], [1], [0, 0, 1, 1], [], []>} : vector<8x2352xbf16>, vector<2352x100xbf16>, vector<8x100xf32> -> vector<8x100xf32>
    %c0_3 = arith.constant 0 : index
    %c0_4 = arith.constant 0 : index
    %4 = vector.load %arg2[%c0_3, %c0_4] : memref<1x100xf32, #tpu.memory_space<vmem>>, vector<1x100xf32>
    %5 = vector.broadcast %4 : vector<1x100xf32> to vector<8x100xf32>
    %6 = arith.addf %3, %5 : vector<8x100xf32>
    %cst_5 = arith.constant 0.000000e+00 : f32
    %7 = vector.broadcast %cst_5 : f32 to vector<8x100xf32>
    %8 = arith.maximumf %6, %7 : vector<8x100xf32>
    %c0_6 = arith.constant 0 : index
    %c0_7 = arith.constant 0 : index
    %9 = vector.load %arg3[%c0_6, %c0_7] : memref<100x2xf32, #tpu.memory_space<vmem>>, vector<100x2xf32>
    %cst_8 = arith.constant dense<0.000000e+00> : vector<8x2xf32>
    %10 = tpu.matmul %8, %9, %cst_8 {dimension_numbers = #tpu.dot_dimension_numbers<[1], [0], [0], [1], [0, 0, 1, 1], [], []>} : vector<8x100xf32>, vector<100x2xf32>, vector<8x2xf32> -> vector<8x2xf32>
    %c0_9 = arith.constant 0 : index
    %c0_10 = arith.constant 0 : index
    %11 = vector.load %arg4[%c0_9, %c0_10] : memref<1x2xf32, #tpu.memory_space<vmem>>, vector<1x2xf32>
    %12 = vector.broadcast %11 : vector<1x2xf32> to vector<8x2xf32>
    %13 = arith.addf %10, %12 : vector<8x2xf32>
    %cst_11 = arith.constant dense<0xFF800000> : vector<8xf32>
    %14 = vector.multi_reduction <maximumf>, %13, %cst_11 [1] : vector<8x2xf32> to vector<8xf32>
    %15 = vector.shape_cast %14 : vector<8xf32> to vector<8x1xf32>
    %16 = vector.broadcast %15 : vector<8x1xf32> to vector<8x2xf32>
    %17 = arith.subf %13, %16 : vector<8x2xf32>
    %18 = math.exp %17 : vector<8x2xf32>
    %cst_12 = arith.constant dense<0.000000e+00> : vector<8xf32>
    %19 = vector.multi_reduction <add>, %18, %cst_12 [1] : vector<8x2xf32> to vector<8xf32>
    %20 = vector.shape_cast %19 : vector<8xf32> to vector<8x1xf32>
    %21 = tpu.reciprocal %20 {approx = true} : vector<8x1xf32> -> vector<8x1xf32>
    %22 = vector.broadcast %21 : vector<8x1xf32> to vector<8x2xf32>
    %23 = arith.mulf %18, %22 : vector<8x2xf32>
    %c0_13 = arith.constant 0 : index
    %c0_14 = arith.constant 0 : index
    %24 = vector.load %arg5[%c0_13, %c0_14] : memref<8x2xf32, #tpu.memory_space<vmem>>, vector<8x2xf32>
    tpu.vector_store %arg5[%c0_13, %c0_14], %23 {strides = array<i32>} : memref<8x2xf32, #tpu.memory_space<vmem>>, vector<8x2xf32>,
    %c0_15 = arith.constant 0 : index
    %c0_16 = arith.constant 0 : index
    %25 = vector.load %arg6[%c0_15, %c0_16] : memref<8x2xf32, #tpu.memory_space<vmem>>, vector<8x2xf32>
    tpu.vector_store %arg6[%c0_15, %c0_16], %13 {strides = array<i32>} : memref<8x2xf32, #tpu.memory_space<vmem>>, vector<8x2xf32>,
    return
  }
}

</mosaic_0001>

<bundles_post_ra>
// kernel: sum_discriminator_forward.1
= control target key start
LH: loop header
LB: loop body
LE: loop exit
PB: predicated region body
PF: predicated region fallthrough
CT: control target
= control target key end

     0   :  { %vm2330_vm0 = vmmov 0   ;;  %vm1244_vm1 = vcmask 392192   ;;  %vm1673_vm2 = vcmask 1043456   ;;  %vm1669_vm3 = vcmask 818176   ;;  %s2939_s1 = inlined_call_operand.vmem [shape: bf16[2352,100], index: 1, kind: input, shape index: {}]   ;;  %s2940_s0 = inlined_call_operand.vmem [shape: f32[8,2352], index: 0, kind: input, shape index: {}]   ;;  %s2941_s3 = inlined_call_operand.vmem [shape: f32[100,2], index: 3, kind: input, shape index: {}]   ;;  %s2942_s2 = inlined_call_operand.vmem [shape: f32[1,100], index: 2, kind: input, shape index: {}]   ;;  %s2943_s4 = inlined_call_operand.vmem [shape: f32[1,2], index: 4, kind: input, shape index: {}]   ;;  %s2944_s6 = inlined_call_operand.vmem [shape: f32[8,2], index: 6, kind: output, shape index: {1}]   ;;  %s2945_s5 = inlined_call_operand.vmem [shape: f32[8,2], index: 5, kind: output, shape index: {0}]  }
   0x1   :  { %v2178_v0 = vld [vmem:[%s2939_s1 + $0x78] sm:$0xff]   ;;  %v2182_v4 = vld [vmem:[%s2939_s1 + $0x70] sm:$0xff]   ;;  %v2186_v8 = vld [vmem:[%s2939_s1 + $0x68] sm:$0xff]   ;;  %vm1747_vm4 = vcmask 15360  }
   0x2   :  { %v2179_v1 = vld [vmem:[%s2939_s1 + $0x38] sm:$0xff]   ;;  %1921 = vmatprep.subr.bf16.mxu0 %v2178_v0  ;;  %v2183_v5 = vld [vmem:[%s2939_s1 + $0x30] sm:$0xff]   ;;  %v2187_v9 = vld [vmem:[%s2939_s1 + $0x28] sm:$0xff]  }
   0x3   :  { %v2180_v2 = vld [vmem:[%s2939_s1 + $0xf8] sm:$0xff]   ;;  %1922 = vmatpush3.bf16.msra.mxu0 %v2179_v1  ;;  %v2184_v6 = vld [vmem:[%s2939_s1 + $0xf0] sm:$0xff]   ;;  %v2188_v10 = vld [vmem:[%s2939_s1 + $0xe8] sm:$0xff]  }
   0x4   :  { %v2181_v3 = vld [vmem:[%s2939_s1 + $0xb8] sm:$0xff]   ;;  %1943 = vmatprep.subr.bf16.mxu1 %v2180_v2  ;;  %1923 = vmatprep.subr.bf16.mxu0 %v2182_v4  ;;  %v2185_v7 = vld [vmem:[%s2939_s1 + $0xb0] sm:$0xff]   ;;  %v2189_v11 = vld [vmem:[%s2939_s1 + $0xa8] sm:$0xff]  }
   0x5   :  { %1944 = vmatpush3.bf16.msra.mxu1 %v2181_v3  ;;  %v2190_v12 = vld [vmem:[%s2939_s1 + $0x60] sm:$0xff]   ;;  %v2194_v16 = vld [vmem:[%s2939_s1 + $0x58] sm:$0xff]   ;;  %v2198_v20 = vld [vmem:[%s2939_s1 + $0x50] sm:$0xff]  }
   0x6   :  { %1945 = vmatprep.subr.bf16.mxu1 %v2184_v6  ;;  %v2191_v13 = vld [vmem:[%s2939_s1 + $0x20] sm:$0xff]   ;;  %v2195_v17 = vld [vmem:[%s2939_s1 + $0x18] sm:$0xff]   ;;  %v2199_v21 = vld [vmem:[%s2939_s1 + $0x10] sm:$0xff]  }
   0x7   :  { %1924 = vmatpush3.bf16.msra.mxu0 %v2183_v5  ;;  %v2192_v14 = vld [vmem:[%s2939_s1 + $0xe0] sm:$0xff]   ;;  %v2196_v18 = vld [vmem:[%s2939_s1 + $0xd8] sm:$0xff]   ;;  %v2200_v22 = vld [vmem:[%s2939_s1 + $0xd0] sm:$0xff]  }
   0x8   :  { %1925 = vmatprep.subr.bf16.mxu0 %v2186_v8  ;;  %v2193_v15 = vld [vmem:[%s2939_s1 + $0xa0] sm:$0xff]   ;;  %v2197_v19 = vld [vmem:[%s2939_s1 + $0x98] sm:$0xff]   ;;  %v2201_v23 = vld [vmem:[%s2939_s1 + $0x90] sm:$0xff]  }
   0x9   :  { %1946 = vmatpush3.bf16.msra.mxu1 %v2185_v7  ;;  %v2202_v24 = vld [vmem:[%s2939_s1 + $0x48] sm:$0xff]   ;;  %v2206_v28 = vld [vmem:[%s2939_s1 + $0x40] sm:$0xff]   ;;  %v2210_v36 = vld [vmem:[%s2939_s1 + $0x178] sm:$0xff]  }
   0xa   :  { %1947 = vmatprep.subr.bf16.mxu1 %v2188_v10  ;;  %v2203_v25 = vld [vmem:[%s2939_s1 + $0x8] sm:$0xff]   ;;  %v2207_v29 = vld [vmem:[%s2939_s1] sm:$0xff]   ;;  %v26_v37 = vld [vmem:[%s2940_s0 + $0x18] sm:$0xff] }
   0xb   :  { %1926 = vmatpush3.bf16.msra.mxu0 %v2187_v9  ;;  %v2204_v26 = vld [vmem:[%s2939_s1 + $0xc8] sm:$0xff]   ;;  %v2208_v30 = vld [vmem:[%s2939_s1 + $0xc0] sm:$0xff]   ;;  %v45_v38 = vpack.c.bf16 %v26_v37, %v26_v37  ;;  %v2211_v39 = vld [vmem:[%s2939_s1 + $0x138] sm:$0xff]  }
   0xc   :  { %1927 = vmatprep.subr.bf16.mxu0 %v2190_v12  ;;  %v2205_v27 = vld [vmem:[%s2939_s1 + $0x88] sm:$0xff]   ;;  %v2209_v33 = vld [vmem:[%s2939_s1 + $0x80] sm:$0xff]   ;;  %v25_v40 = vld [vmem:[%s2940_s0 + $0x10] sm:$0xff] }
   0xd   :  { %1948 = vmatpush3.bf16.msra.mxu1 %v2189_v11  ;;  %v24_v31 = vld [vmem:[%s2940_s0 + $0x8] sm:$0xff]  ;;  %v23_v34 = vld [vmem:[%s2940_s0] sm:$0xff]  ;;  %1320 = vmatprep.mubr.bf16.mxu1 %v45_v38  ;;  %v44_v41 = vpack.c.bf16 %v25_v40, %v25_v40  ;;  %v2212_v42 = vld [vmem:[%s2939_s1 + $0x1f8] sm:$0xff]  }
   0xe   :  { %1949 = vmatprep.subr.bf16.mxu1 %v2192_v14  ;;  %v43_v32 = vpack.c.bf16 %v24_v31, %v24_v31  ;;  %v42_v35 = vpack.c.bf16 %v23_v34, %v23_v34  ;;  %v2213_v43 = vld [vmem:[%s2939_s1 + $0x1b8] sm:$0xff]   ;;  %v2214_v44 = vld [vmem:[%s2939_s1 + $0x170] sm:$0xff]   ;;  %v2218_v48 = vld [vmem:[%s2939_s1 + $0x168] sm:$0xff]  }
   0xf   :  { %1928 = vmatpush3.bf16.msra.mxu0 %v2191_v13  ;;  %v2215_v45 = vld [vmem:[%s2939_s1 + $0x130] sm:$0xff]   ;;  %v2219_v49 = vld [vmem:[%s2939_s1 + $0x128] sm:$0xff]   ;;  %v2222_v52 = vld [vmem:[%s2939_s1 + $0x160] sm:$0xff]  }
  0x10   :  { %1929 = vmatprep.subr.bf16.mxu0 %v2194_v16  ;;  %1280 = vmatprep.mubr.bf16.mxu0 %v43_v32  ;;  %v2216_v46 = vld [vmem:[%s2939_s1 + $0x1f0] sm:$0xff]   ;;  %v2220_v50 = vld [vmem:[%s2939_s1 + $0x1e8] sm:$0xff]   ;;  %v2223_v53 = vld [vmem:[%s2939_s1 + $0x120] sm:$0xff]  }
  0x11   :  { %1950 = vmatpush3.bf16.msra.mxu1 %v2193_v15  ;;  %v2217_v47 = vld [vmem:[%s2939_s1 + $0x1b0] sm:$0xff]   ;;  %v2221_v51 = vld [vmem:[%s2939_s1 + $0x1a8] sm:$0xff]   ;;  %v2224_v54 = vld [vmem:[%s2939_s1 + $0x1e0] sm:$0xff]  }
  0x12   :  { %1951 = vmatprep.subr.bf16.mxu1 %v2196_v18  ;;  %v2225_v55 = vld [vmem:[%s2939_s1 + $0x1a0] sm:$0xff]   ;;  %v2226_v56 = vld [vmem:[%s2939_s1 + $0x158] sm:$0xff]   ;;  %v2230_v60 = vld [vmem:[%s2939_s1 + $0x150] sm:$0xff]  }
  0x13   :  { %1930 = vmatpush3.bf16.msra.mxu0 %v2195_v17  ;;  %v2227_v57 = vld [vmem:[%s2939_s1 + $0x118] sm:$0xff]   ;;  %v2231_v61 = vld [vmem:[%s2939_s1 + $0x110] sm:$0xff]   ;;  %v2234_v0 = vld [vmem:[%s2939_s1 + $0x148] sm:$0xff]  }
  0x14   :  { %1931 = vmatprep.subr.bf16.mxu0 %v2198_v20  ;;  %v2228_v58 = vld [vmem:[%s2939_s1 + $0x1d8] sm:$0xff]   ;;  %v2232_v62 = vld [vmem:[%s2939_s1 + $0x1d0] sm:$0xff]   ;;  %v2235_v1 = vld [vmem:[%s2939_s1 + $0x108] sm:$0xff]  }
  0x15   :  { %1952 = vmatpush3.bf16.msra.mxu1 %v2197_v19  ;;  %v2229_v59 = vld [vmem:[%s2939_s1 + $0x198] sm:$0xff]   ;;  %v2233_v63 = vld [vmem:[%s2939_s1 + $0x190] sm:$0xff]   ;;  %v2236_v2 = vld [vmem:[%s2939_s1 + $0x1c8] sm:$0xff]  }
  0x16   :  { %1953 = vmatprep.subr.bf16.mxu1 %v2200_v22  ;;  %v2237_v3 = vld [vmem:[%s2939_s1 + $0x188] sm:$0xff]   ;;  %v2238_v4 = vld [vmem:[%s2939_s1 + $0x140] sm:$0xff]   ;;  %v2242_v12 = vld [vmem:[%s2939_s1 + $0x278] sm:$0xff]  }
  0x17   :  { %1932 = vmatpush3.bf16.msra.mxu0 %v2199_v21  ;;  %v2239_v5 = vld [vmem:[%s2939_s1 + $0x100] sm:$0xff]   ;;  %v28_v7 = vld [vmem:[%s2940_s0 + $0x28] sm:$0xff]  ;;  %v30_v13 = vld [vmem:[%s2940_s0 + $0x38] sm:$0xff] }
  0x18   :  { %1933 = vmatprep.subr.bf16.mxu0 %v2202_v24  ;;  %v2240_v6 = vld [vmem:[%s2939_s1 + $0x1c0] sm:$0xff]   ;;  %v47_v8 = vpack.c.bf16 %v28_v7, %v28_v7  ;;  %v49_v14 = vpack.c.bf16 %v30_v13, %v30_v13  ;;  %v2243_v15 = vld [vmem:[%s2939_s1 + $0x238] sm:$0xff]   ;;  %v29_v16 = vld [vmem:[%s2940_s0 + $0x30] sm:$0xff] }
  0x19   :  { %1954 = vmatpush3.bf16.msra.mxu1 %v2201_v23  ;;  %v2241_v9 = vld [vmem:[%s2939_s1 + $0x180] sm:$0xff]   ;;  %v48_v17 = vpack.c.bf16 %v29_v16, %v29_v16  ;;  %v2244_v18 = vld [vmem:[%s2939_s1 + $0x2f8] sm:$0xff]   ;;  %v2246_v20 = vld [vmem:[%s2939_s1 + $0x270] sm:$0xff]  }
  0x1a   :  { %1955 = vmatprep.subr.bf16.mxu1 %v2204_v26  ;;  %v27_v10 = vld [vmem:[%s2940_s0 + $0x20] sm:$0xff]  ;;  %v2245_v19 = vld [vmem:[%s2939_s1 + $0x2b8] sm:$0xff]   ;;  %v2247_v21 = vld [vmem:[%s2939_s1 + $0x230] sm:$0xff]  }
  0x1b   :  { %1934 = vmatpush3.bf16.msra.mxu0 %v2203_v25  ;;  %v46_v11 = vpack.c.bf16 %v27_v10, %v27_v10  ;;  %v2248_v22 = vld [vmem:[%s2939_s1 + $0x2f0] sm:$0xff]   ;;  %v2250_v24 = vld [vmem:[%s2939_s1 + $0x268] sm:$0xff]   ;;  %v2257_v31 = vld [vmem:[%s2939_s1 + $0x2a0] sm:$0xff]  }
  0x1c   :  { %1935 = vmatprep.subr.bf16.mxu0 %v2206_v28  ;;  %v2249_v23 = vld [vmem:[%s2939_s1 + $0x2b0] sm:$0xff]   ;;  %v2251_v25 = vld [vmem:[%s2939_s1 + $0x228] sm:$0xff]   ;;  %v2254_v28 = vld [vmem:[%s2939_s1 + $0x260] sm:$0xff]  }
  0x1d   :  { %1956 = vmatpush3.bf16.msra.mxu1 %v2205_v27  ;;  %v2252_v26 = vld [vmem:[%s2939_s1 + $0x2e8] sm:$0xff]   ;;  %v2258_v32 = vld [vmem:[%s2939_s1 + $0x258] sm:$0xff]   ;;  %v2263_v37 = vld [vmem:[%s2939_s1 + $0x210] sm:$0xff]  }
  0x1e   :  { %1957 = vmatprep.subr.bf16.mxu1 %v2208_v30  ;;  %v2253_v27 = vld [vmem:[%s2939_s1 + $0x2a8] sm:$0xff]   ;;  %v2256_v30 = vld [vmem:[%s2939_s1 + $0x2e0] sm:$0xff]   ;;  %v2260_v34 = vld [vmem:[%s2939_s1 + $0x2d8] sm:$0xff]  }
  0x1f   :  { %1936 = vmatpush3.bf16.msra.mxu0 %v2207_v29  ;;  %v2255_v29 = vld [vmem:[%s2939_s1 + $0x220] sm:$0xff]   ;;  %v2264_v38 = vld [vmem:[%s2939_s1 + $0x2d0] sm:$0xff]   ;;  %v2266_v40 = vld [vmem:[%s2939_s1 + $0x248] sm:$0xff]  }
  0x20   :  { %1965 = vmatprep.subr.bf16.mxu0 %v2210_v36  ;;  %v2262_v36 = vld [vmem:[%s2939_s1 + $0x250] sm:$0xff]   ;;  %v2289_v7 = vld [vmem:[%s2939_s1 + $0x3a0] sm:$0xff]   ;;  %v2292_v10 = vld [vmem:[%s2939_s1 + $0x3d8] sm:$0xff]  }
  0x21   :  { %1958 = vmatpush3.bf16.msra.mxu1 %v2209_v33  ;;  %v2259_v33 = vld [vmem:[%s2939_s1 + $0x218] sm:$0xff]   ;;  %v2295_v13 = vld [vmem:[%s2939_s1 + $0x310] sm:$0xff]   ;;  %v2298_v16 = vld [vmem:[%s2939_s1 + $0x348] sm:$0xff]  }
  0x22   :  { %1281 = vmatmul.mubr.bf16.vlgmr.msra.gmra.mxu0 %v42_v35  ;;  %1987 = vmatprep.subr.bf16.mxu1 %v2212_v42  ;;  %v2261_v35 = vld [vmem:[%s2939_s1 + $0x298] sm:$0xff]   ;;  %v2268_v42 = vld [vmem:[%s2939_s1 + $0x2c8] sm:$0xff]  }
  0x23   :  { %1966 = vmatpush3.bf16.msra.mxu0 %v2211_v39  ;;  %1360 = vmatprep.mubr.bf16.mxu0 %v47_v8  ;;  %v2265_v39 = vld [vmem:[%s2939_s1 + $0x290] sm:$0xff]   ;;  %v2290_v8 = vld [vmem:[%s2939_s1 + $0x358] sm:$0xff]  }
  0x24   :  { %1321 = vmatmul.mubr.bf16.vlgmr.msra.gmra.mxu1 %v44_v41  ;;  %1967 = vmatprep.subr.bf16.mxu0 %v2214_v44  ;;  %v2267_v41 = vld [vmem:[%s2939_s1 + $0x208] sm:$0xff]   ;;  %v2270_v44 = vld [vmem:[%s2939_s1 + $0x240] sm:$0xff]  }
  0x25   :  { %1988 = vmatpush3.bf16.msra.mxu1 %v2213_v43  ;;  %1400 = vmatprep.mubr.bf16.mxu1 %v49_v14  ;;  %v2269_v43 = vld [vmem:[%s2939_s1 + $0x288] sm:$0xff]   ;;  %v2296_v14 = vld [vmem:[%s2939_s1 + $0x3d0] sm:$0xff]  }
  0x26   :  { %1989 = vmatprep.subr.bf16.mxu1 %v2216_v46  ;;  %v2272_v46 = vld [vmem:[%s2939_s1 + $0x2c0] sm:$0xff]  }
  0x27   :  { %1968 = vmatpush3.bf16.msra.mxu0 %v2215_v45  ;;  %v2271_v45 = vld [vmem:[%s2939_s1 + $0x200] sm:$0xff]  }
  0x28   :  { %1969 = vmatprep.subr.bf16.mxu0 %v2218_v48 }
  0x29   :  { %1990 = vmatpush3.bf16.msra.mxu1 %v2217_v47  ;;  %v32_v47 = vld [vmem:[%s2940_s0 + $0x48] sm:$0xff] }
  0x2a   :  { %1991 = vmatprep.subr.bf16.mxu1 %v2220_v50  ;;  %v51_v48 = vpack.c.bf16 %v32_v47, %v32_v47  ;;  %v31_v50 = vld [vmem:[%s2940_s0 + $0x40] sm:$0xff] }
  0x2b   :  { %1970 = vmatpush3.bf16.msra.mxu0 %v2219_v49  ;;  %v2273_v49 = vld [vmem:[%s2939_s1 + $0x280] sm:$0xff]  }
  0x2c   :  { %1971 = vmatprep.subr.bf16.mxu0 %v2222_v52  ;;  %v2274_v52 = vld [vmem:[%s2939_s1 + $0x378] sm:$0xff]   ;;  %v2324_v47 = vld [vmem:[%s2939_s1 + $0x480] sm:$0xff]  }
  0x2d   :  { %1992 = vmatpush3.bf16.msra.mxu1 %v2221_v51  ;;  %v50_v51 = vpack.c.bf16 %v31_v50, %v31_v50 }
  0x2e   :  { %1993 = vmatprep.subr.bf16.mxu1 %v2224_v54 }
  0x2f   :  { %1972 = vmatpush3.bf16.msra.mxu0 %v2223_v53  ;;  %v34_v53 = vld [vmem:[%s2940_s0 + $0x58] sm:$0xff] }
  0x30   :  { %1973 = vmatprep.subr.bf16.mxu0 %v2226_v56  ;;  %v53_v54 = vpack.c.bf16 %v34_v53, %v34_v53  ;;  %v33_v56 = vld [vmem:[%s2940_s0 + $0x50] sm:$0xff]  ;;  %v2320_v53 = vld [vmem:[%s2939_s1 + $0x408] sm:$0xff]  }
  0x31   :  { %1994 = vmatpush3.bf16.msra.mxu1 %v2225_v55  ;;  %v2275_v55 = vld [vmem:[%s2939_s1 + $0x338] sm:$0xff]  }
  0x32   :  { %1995 = vmatprep.subr.bf16.mxu1 %v2228_v58  ;;  %v2276_v58 = vld [vmem:[%s2939_s1 + $0x3f8] sm:$0xff]  }
  0x33   :  { %1974 = vmatpush3.bf16.msra.mxu0 %v2227_v57  ;;  %v52_v57 = vpack.c.bf16 %v33_v56, %v33_v56  ;;  %v39_v56 = vld [vmem:[%s2940_s0 + $0x80] sm:$0xff] }
  0x34   :  { %1975 = vmatprep.subr.bf16.mxu0 %v2230_v60  ;;  %v2278_v60 = vld [vmem:[%s2939_s1 + $0x370] sm:$0xff]  }
  0x35   :  { %1996 = vmatpush3.bf16.msra.mxu1 %v2229_v59  ;;  %v2277_v59 = vld [vmem:[%s2939_s1 + $0x3b8] sm:$0xff]  }
  0x36   :  { %1997 = vmatprep.subr.bf16.mxu1 %v2232_v62  ;;  %v2280_v62 = vld [vmem:[%s2939_s1 + $0x3f0] sm:$0xff]  }
  0x37   :  { %1976 = vmatpush3.bf16.msra.mxu0 %v2231_v61  ;;  %v2279_v61 = vld [vmem:[%s2939_s1 + $0x330] sm:$0xff]  }
  0x38   :  { %1977 = vmatprep.subr.bf16.mxu0 %v2234_v0  ;;  %v2282_v0 = vld [vmem:[%s2939_s1 + $0x368] sm:$0xff]  }
  0x39   :  { %1998 = vmatpush3.bf16.msra.mxu1 %v2233_v63  ;;  %v2281_v63 = vld [vmem:[%s2939_s1 + $0x3b0] sm:$0xff]  }
  0x3a   :  { %1999 = vmatprep.subr.bf16.mxu1 %v2236_v2  ;;  %v2284_v2 = vld [vmem:[%s2939_s1 + $0x3e8] sm:$0xff]  }
  0x3b   :  { %1978 = vmatpush3.bf16.msra.mxu0 %v2235_v1  ;;  %v2283_v1 = vld [vmem:[%s2939_s1 + $0x328] sm:$0xff]  }
  0x3c   :  { %1979 = vmatprep.subr.bf16.mxu0 %v2238_v4  ;;  %v2286_v4 = vld [vmem:[%s2939_s1 + $0x360] sm:$0xff]  }
  0x3d   :  { %2000 = vmatpush3.bf16.msra.mxu1 %v2237_v3  ;;  %v2285_v3 = vld [vmem:[%s2939_s1 + $0x3a8] sm:$0xff]  }
  0x3e   :  { %2001 = vmatprep.subr.bf16.mxu1 %v2240_v6  ;;  %v2288_v6 = vld [vmem:[%s2939_s1 + $0x3e0] sm:$0xff]  }
  0x3f   :  { %1980 = vmatpush3.bf16.msra.mxu0 %v2239_v5  ;;  %v2287_v5 = vld [vmem:[%s2939_s1 + $0x320] sm:$0xff]  }
  0x40   :  { %2009 = vmatprep.subr.bf16.mxu0 %v2242_v12  ;;  %v2294_v12 = vld [vmem:[%s2939_s1 + $0x350] sm:$0xff]  }
  0x41   :  { %2002 = vmatpush3.bf16.msra.mxu1 %v2241_v9  ;;  %v2291_v9 = vld [vmem:[%s2939_s1 + $0x318] sm:$0xff]  }
  0x42   :  { %1361 = vmatmul.mubr.bf16.vlgmr.msra.gmra.mxu0 %v46_v11  ;;  %2031 = vmatprep.subr.bf16.mxu1 %v2244_v18  ;;  %v2293_v11 = vld [vmem:[%s2939_s1 + $0x398] sm:$0xff]   ;;  %v2300_v18 = vld [vmem:[%s2939_s1 + $0x3c8] sm:$0xff]  }
  0x43   :  { %2010 = vmatpush3.bf16.msra.mxu0 %v2243_v15  ;;  %1440 = vmatprep.mubr.bf16.mxu0 %v51_v48  ;;  %v2297_v15 = vld [vmem:[%s2939_s1 + $0x390] sm:$0xff]   ;;  %v40_v48 = vld [vmem:[%s2940_s0 + $0x88] sm:$0xff] }
  0x44   :  { %1401 = vmatmul.mubr.bf16.vlgmr.msra.gmra.mxu1 %v48_v17  ;;  %2011 = vmatprep.subr.bf16.mxu0 %v2246_v20  ;;  %v2299_v17 = vld [vmem:[%s2939_s1 + $0x308] sm:$0xff]   ;;  %v2302_v20 = vld [vmem:[%s2939_s1 + $0x340] sm:$0xff]   ;;  %v59_v50 = vpack.c.bf16 %v40_v48, %v40_v48 }
  0x45   :  { %2032 = vmatpush3.bf16.msra.mxu1 %v2245_v19  ;;  %1480 = vmatprep.mubr.bf16.mxu1 %v53_v54  ;;  %v2301_v19 = vld [vmem:[%s2939_s1 + $0x388] sm:$0xff]   ;;  %v2322_v54 = vld [vmem:[%s2939_s1 + $0x440] sm:$0xff]  }
  0x46   :  { %2033 = vmatprep.subr.bf16.mxu1 %v2248_v22  ;;  %v2304_v22 = vld [vmem:[%s2939_s1 + $0x3c0] sm:$0xff]  }
  0x47   :  { %2012 = vmatpush3.bf16.msra.mxu0 %v2247_v21  ;;  %v2303_v21 = vld [vmem:[%s2939_s1 + $0x300] sm:$0xff]  }
  0x48   :  { %2013 = vmatprep.subr.bf16.mxu0 %v2250_v24 }
  0x49   :  { %2034 = vmatpush3.bf16.msra.mxu1 %v2249_v23  ;;  %v36_v23 = vld [vmem:[%s2940_s0 + $0x68] sm:$0xff] }
  0x4a   :  { %2035 = vmatprep.subr.bf16.mxu1 %v2252_v26  ;;  %v55_v24 = vpack.c.bf16 %v36_v23, %v36_v23  ;;  %v35_v26 = vld [vmem:[%s2940_s0 + $0x60] sm:$0xff] }
  0x4b   :  { %2014 = vmatpush3.bf16.msra.mxu0 %v2251_v25  ;;  %v2305_v25 = vld [vmem:[%s2939_s1 + $0x380] sm:$0xff]  }
  0x4c   :  { %2015 = vmatprep.subr.bf16.mxu0 %v2254_v28  ;;  %v2306_v28 = vld [vmem:[%s2939_s1 + $0x478] sm:$0xff]  }
  0x4d   :  { %2036 = vmatpush3.bf16.msra.mxu1 %v2253_v27  ;;  %v54_v27 = vpack.c.bf16 %v35_v26, %v35_v26 }
  0x4e   :  { %2037 = vmatprep.subr.bf16.mxu1 %v2256_v30 }
  0x4f   :  { %2016 = vmatpush3.bf16.msra.mxu0 %v2255_v29  ;;  %v38_v29 = vld [vmem:[%s2940_s0 + $0x78] sm:$0xff] }
  0x50   :  { %2017 = vmatprep.subr.bf16.mxu0 %v2258_v32  ;;  %v57_v30 = vpack.c.bf16 %v38_v29, %v38_v29  ;;  %v37_v32 = vld [vmem:[%s2940_s0 + $0x70] sm:$0xff] }
  0x51   :  { %2038 = vmatpush3.bf16.msra.mxu1 %v2257_v31  ;;  %v2307_v31 = vld [vmem:[%s2939_s1 + $0x438] sm:$0xff]  }
  0x52   :  { %2039 = vmatprep.subr.bf16.mxu1 %v2260_v34  ;;  %v2308_v34 = vld [vmem:[%s2939_s1 + $0x470] sm:$0xff]  }
  0x53   :  { %2018 = vmatpush3.bf16.msra.mxu0 %v2259_v33  ;;  %v56_v33 = vpack.c.bf16 %v37_v32, %v37_v32 }
  0x54   :  { %2019 = vmatprep.subr.bf16.mxu0 %v2262_v36  ;;  %v2329_v36 = vmov 0.0  }
  0x55   :  { %2040 = vmatpush3.bf16.msra.mxu1 %v2261_v35  ;;  %v2309_v35 = vld [vmem:[%s2939_s1 + $0x430] sm:$0xff]  }
  0x56   :  { %2041 = vmatprep.subr.bf16.mxu1 %v2264_v38  ;;  %v2311_v38 = vld [vmem:[%s2939_s1 + $0x428] sm:$0xff]  }
  0x57   :  { %2020 = vmatpush3.bf16.msra.mxu0 %v2263_v37  ;;  %v2310_v37 = vld [vmem:[%s2939_s1 + $0x468] sm:$0xff]  }
  0x58   :  { %2021 = vmatprep.subr.bf16.mxu0 %v2266_v40  ;;  %v2313_v40 = vld [vmem:[%s2939_s1 + $0x420] sm:$0xff]  }
  0x59   :  { %2042 = vmatpush3.bf16.msra.mxu1 %v2265_v39  ;;  %v2312_v39 = vld [vmem:[%s2939_s1 + $0x460] sm:$0xff]  }
  0x5a   :  { %2043 = vmatprep.subr.bf16.mxu1 %v2268_v42  ;;  %v2318_v42 = vld [vmem:[%s2939_s1 + $0x490] sm:$0xff]  }
  0x5b   :  { %2022 = vmatpush3.bf16.msra.mxu0 %v2267_v41  ;;  %v2314_v41 = vld [vmem:[%s2939_s1 + $0x458] sm:$0xff]  }
  0x5c   :  { %2023 = vmatprep.subr.bf16.mxu0 %v2270_v44  ;;  %v2316_v44 = vld [vmem:[%s2939_s1 + $0x450] sm:$0xff]  }
  0x5d   :  { %2044 = vmatpush3.bf16.msra.mxu1 %v2269_v43  ;;  %v2315_v43 = vld [vmem:[%s2939_s1 + $0x418] sm:$0xff]  }
  0x5e   :  { %2045 = vmatprep.subr.bf16.mxu1 %v2272_v46  ;;  %v2317_v46 = vld [vmem:[%s2939_s1 + $0x410] sm:$0xff]  }
  0x5f   :  { %2024 = vmatpush3.bf16.msra.mxu0 %v2271_v45  ;;  %v2321_v45 = vld [vmem:[%s2939_s1 + $0x488] sm:$0xff]  }
  0x60   :  { %2053 = vmatprep.subr.bf16.mxu0 %v2274_v52 }
  0x61   :  { %2046 = vmatpush3.bf16.msra.mxu1 %v2273_v49  ;;  %v2319_v49 = vld [vmem:[%s2939_s1 + $0x448] sm:$0xff]  }
  0x62   :  { %1441 = vmatmul.mubr.bf16.vlgmr.msra.gmra.mxu0 %v50_v51  ;;  %2075 = vmatprep.subr.bf16.mxu1 %v2276_v58  ;;  %v41_v51 = vld [vmem:[%s2940_s0 + $0x90] sm:$0xff]  ;;  %v1661_v58 = vld [vmem:[%s2941_s3 + $0x60] sm:$0xf] }
  0x63   :  { %2054 = vmatpush3.bf16.msra.mxu0 %v2275_v55  ;;  %1520 = vmatprep.mubr.bf16.mxu0 %v55_v24  ;;  %v60_v52 = vpack.c.bf16 %v41_v51, %v41_v51  ;;  %v2323_v55 = vld [vmem:[%s2939_s1 + $0x400] sm:$0xff]  }
  0x64   :  { %1481 = vmatmul.mubr.bf16.vlgmr.msra.gmra.mxu1 %v52_v57  ;;  %2055 = vmatprep.subr.bf16.mxu0 %v2278_v60  ;;  %v58_v57 = vpack.c.bf16 %v39_v56, %v39_v56  ;;  %v1659_v60 = vld [vmem:[%s2941_s3 + $0x50] sm:$0xff] }
  0x65   :  { %2076 = vmatpush3.bf16.msra.mxu1 %v2277_v59  ;;  %1560 = vmatprep.mubr.bf16.mxu1 %v57_v30  ;;  %v1660_v59 = vld [vmem:[%s2941_s3 + $0x58] sm:$0xff] }
  0x66   :  { %2077 = vmatprep.subr.bf16.mxu1 %v2280_v62  ;;  %v1657_v62 = vld [vmem:[%s2941_s3 + $0x40] sm:$0xff] }
  0x67   :  { %2056 = vmatpush3.bf16.msra.mxu0 %v2279_v61  ;;  %v1658_v61 = vld [vmem:[%s2941_s3 + $0x48] sm:$0xff] }
  0x68   :  { %2057 = vmatprep.subr.bf16.mxu0 %v2282_v0  ;;  %v1655_v0 = vld [vmem:[%s2941_s3 + $0x30] sm:$0xff] }
  0x69   :  { %2078 = vmatpush3.bf16.msra.mxu1 %v2281_v63  ;;  %v1656_v63 = vld [vmem:[%s2941_s3 + $0x38] sm:$0xff] }
  0x6a   :  { %2079 = vmatprep.subr.bf16.mxu1 %v2284_v2  ;;  %v1769_v2 = vld [vmem:[%s2942_s2] ss:$0 sm:$0xff] }
  0x6b   :  { %2058 = vmatpush3.bf16.msra.mxu0 %v2283_v1 }
  0x6c   :  { %2059 = vmatprep.subr.bf16.mxu0 %v2286_v4 }
  0x6d   :  { %2080 = vmatpush3.bf16.msra.mxu1 %v2285_v3 }
  0x6e   :  { %2081 = vmatprep.subr.bf16.mxu1 %v2288_v6 }
  0x6f   :  { %2060 = vmatpush3.bf16.msra.mxu0 %v2287_v5 }
  0x70   :  { %2061 = vmatprep.subr.bf16.mxu0 %v2290_v8 }
  0x71   :  { %2082 = vmatpush3.bf16.msra.mxu1 %v2289_v7  ;;  %v1654_v7 = vld [vmem:[%s2941_s3 + $0x28] sm:$0xff] }
  0x72   :  { %2083 = vmatprep.subr.bf16.mxu1 %v2292_v10 }
  0x73   :  { %2062 = vmatpush3.bf16.msra.mxu0 %v2291_v9 }
  0x74   :  { %2063 = vmatprep.subr.bf16.mxu0 %v2294_v12  ;;  %v1653_v12 = vld [vmem:[%s2941_s3 + $0x20] sm:$0xff] }
  0x75   :  { %2084 = vmatpush3.bf16.msra.mxu1 %v2293_v11 }
  0x76   :  { %2085 = vmatprep.subr.bf16.mxu1 %v2296_v14 }
  0x77   :  { %2064 = vmatpush3.bf16.msra.mxu0 %v2295_v13 }
  0x78   :  { %2065 = vmatprep.subr.bf16.mxu0 %v2298_v16 }
  0x79   :  { %2086 = vmatpush3.bf16.msra.mxu1 %v2297_v15  ;;  %v1652_v15 = vld [vmem:[%s2941_s3 + $0x18] sm:$0xff] }
  0x7a   :  { %2087 = vmatprep.subr.bf16.mxu1 %v2300_v18  ;;  %v1650_v18 = vld [vmem:[%s2941_s3 + $0x8] sm:$0xff] }
  0x7b   :  { %2066 = vmatpush3.bf16.msra.mxu0 %v2299_v17  ;;  %v1651_v17 = vld [vmem:[%s2941_s3 + $0x10] sm:$0xff] }
  0x7c   :  { %2067 = vmatprep.subr.bf16.mxu0 %v2302_v20 }
  0x7d   :  { %2088 = vmatpush3.bf16.msra.mxu1 %v2301_v19  ;;  %v1649_v19 = vld [vmem:[%s2941_s3] sm:$0xff] }
  0x7e   :  { %2089 = vmatprep.subr.bf16.mxu1 %v2304_v22 }
  0x7f   :  { %2068 = vmatpush3.bf16.msra.mxu0 %v2303_v21 }
  0x80   :  { %2097 = vmatprep.subr.bf16.mxu0 %v2306_v28 }
  0x81   :  { %2090 = vmatpush3.bf16.msra.mxu1 %v2305_v25 }
  0x82   :  { %1521 = vmatmul.mubr.bf16.vlgmr.msra.gmra.mxu0 %v54_v27  ;;  %2137 = vmatprep.subr.bf16.mxu1 %v2329_v36 }
  0x83   :  { %2098 = vmatpush3.bf16.msra.mxu0 %v2307_v31  ;;  %1600 = vmatprep.mubr.bf16.mxu0 %v59_v50 }
  0x84   :  { %1561 = vmatmul.mubr.bf16.vlgmr.msra.gmra.mxu1 %v56_v33  ;;  %2099 = vmatprep.subr.bf16.mxu0 %v2308_v34 }
  0x85   :  { %2143 = vmatprep.mubr.msk.bf16.mxu1 %vm2330_vm0, %v2329_v36  ;;  %2138 = vmatpush3.bf16.msra.mxu1 %v2318_v42 }
  0x86   :  { %2139 = vmatprep.subr.bf16.mxu1 %v2329_v36 }
  0x87   :  { %2100 = vmatpush3.bf16.msra.mxu0 %v2309_v35 }
  0x88   :  { %2101 = vmatprep.subr.bf16.mxu0 %v2310_v37 }
  0x89   :  { %2140 = vmatpush3.bf16.msra.mxu1 %v2321_v45 }
  0x8a   :  { %2141 = vmatprep.subr.bf16.mxu1 %v2329_v36 }
  0x8b   :  { %2102 = vmatpush3.bf16.msra.mxu0 %v2311_v38 }
  0x8c   :  { %2103 = vmatprep.subr.bf16.mxu0 %v2312_v39 }
  0x8d   :  { %2142 = vmatpush3.bf16.msra.mxu1 %v2324_v47 }
  0x8e   :  { %2147 = vmatprep.subr.mxu1 %v2329_v36 }
  0x8f   :  { %2104 = vmatpush3.bf16.msra.mxu0 %v2313_v40 }
  0x90   :  { %2105 = vmatprep.subr.bf16.mxu0 %v2314_v41  ;;  %2144 = vmatmul.mubr.msk.bf16.vlgmr.msra.gmra.mxu1 %vm1244_vm1, %v60_v52 }
  0x91   :  { %2173 = vmatprep.mubr.msk.f32.mxu1 %vm2330_vm0, %v2329_v36  ;;  %2148 = vmatpush3.msk.msra.mxu1 %vm1673_vm2, %v1661_v58 }
  0x92   :  { %2149 = vmatprep.subr.mxu1 %v2329_v36 }
  0x93   :  { %2106 = vmatpush3.bf16.msra.mxu0 %v2315_v43  ;;  %2150 = vmatpush3.msra.mxu1 %v1660_v59 }
  0x94   :  { %2107 = vmatprep.subr.bf16.mxu0 %v2316_v44  ;;  %2151 = vmatprep.subr.mxu1 %v2329_v36 }
  0x95   :  { %2152 = vmatpush3.msra.mxu1 %v1659_v60 }
  0x96   :  { %2153 = vmatprep.subr.mxu1 %v2329_v36 }
  0x97   :  { %2108 = vmatpush3.bf16.msra.mxu0 %v2317_v46  ;;  %2154 = vmatpush3.msra.mxu1 %v1658_v61 }
  0x98   :  { %2109 = vmatprep.subr.bf16.mxu0 %v2319_v49  ;;  %2155 = vmatprep.subr.mxu1 %v2329_v36 }
  0x99   :  { %2156 = vmatpush3.msra.mxu1 %v1657_v62 }
  0x9a   :  { %2157 = vmatprep.subr.mxu1 %v2329_v36 }
  0x9b   :  { %2110 = vmatpush3.bf16.msra.mxu0 %v2320_v53  ;;  %2158 = vmatpush3.msra.mxu1 %v1656_v63 }
  0x9c   :  { %2111 = vmatprep.subr.bf16.mxu0 %v2322_v54  ;;  %2159 = vmatprep.subr.mxu1 %v2329_v36 }
  0x9d   :  { %2160 = vmatpush3.msra.mxu1 %v1655_v0 }
  0x9e   :  { %2161 = vmatprep.subr.mxu1 %v2329_v36 }
  0x9f   :  { %2112 = vmatpush3.bf16.msra.mxu0 %v2323_v55  ;;  %2162 = vmatpush3.msra.mxu1 %v1654_v7 }
  0xa0   :  { %2163 = vmatprep.subr.mxu1 %v2329_v36 }
  0xa1   :  { %2164 = vmatpush3.msra.mxu1 %v1653_v12 }
  0xa2   :  { %1601 = vmatmul.mubr.bf16.vlgmr.msra.gmra.mxu0 %v58_v57  ;;  %2165 = vmatprep.subr.mxu1 %v2329_v36 }
  0xa3   :  { %2166 = vmatpush3.msra.mxu1 %v1652_v15 }
  0xa4   :  { %2167 = vmatprep.subr.mxu1 %v2329_v36 }
  0xa5   :  { %2168 = vmatpush3.msra.mxu1 %v1651_v17 }
  0xa6   :  { %2169 = vmatprep.subr.mxu1 %v2329_v36 }
  0xa7   :  { %2170 = vmatpush3.msra.mxu1 %v1650_v18 }
  0xa8   :  { %2171 = vmatprep.subr.mxu1 %v2329_v36 }
  0xa9   :  { %2172 = vmatpush3.msra.mxu1 %v1649_v19 }
  0xe2   :  { %v1937_v1 = vpop.f32.mrf.mxu0 }
  0xe4   :  { %v1938_v3 = vpop.f32.mrf.mxu0  ;;  %v1959_v5 = vpop.f32.mrf.mxu1 }
  0xe5   :  { %v1939_v4 = vadd.f32 %v1938_v3, %v1937_v1 }
  0xe6   :  { %v1940_v6 = vpop.f32.mrf.mxu0  ;;  %v1960_v9 = vpop.f32.mrf.mxu1 }
  0xe7   :  { %v1283_v8 = vadd.f32 %v1939_v4, %v1769_v2  ;;  %v1961_v10 = vadd.f32 %v1960_v9, %v1959_v5  ;;  %v1918_v4 = vld [vmem:[%s2943_s4] ss:$0 sm:$0xff] }
  0xe8   :  { %v1941_v11 = vpop.f32.mrf.mxu0  ;;  %v1962_v13 = vpop.f32.mrf.mxu1 }
  0xe9   :  { %v1323_v14 = vadd.f32 %v1961_v10, %v1283_v8 }
  0xea   :  { %v1963_v16 = vpop.f32.mrf.mxu1 }
 0x102   :  { %v1981_v20 = vpop.f32.mrf.mxu0 }
 0x104   :  { %v1982_v21 = vpop.f32.mrf.mxu0  ;;  %v2003_v23 = vpop.f32.mrf.mxu1 }
 0x105   :  { %v1983_v22 = vadd.f32 %v1982_v21, %v1981_v20 }
 0x106   :  { %v1984_v24 = vpop.f32.mrf.mxu0  ;;  %v2004_v26 = vpop.f32.mrf.mxu1 }
 0x107   :  { %v1363_v25 = vadd.f32 %v1983_v22, %v1323_v14  ;;  %v2005_v27 = vadd.f32 %v2004_v26, %v2003_v23 }
 0x108   :  { %v1985_v28 = vpop.f32.mrf.mxu0  ;;  %v2006_v29 = vpop.f32.mrf.mxu1 }
 0x109   :  { %v1403_v30 = vadd.f32 %v2005_v27, %v1363_v25 }
 0x10a   :  { %v2007_v31 = vpop.f32.mrf.mxu1 }
 0x122   :  { %v2025_v32 = vpop.f32.mrf.mxu0 }
 0x124   :  { %v2026_v33 = vpop.f32.mrf.mxu0  ;;  %v2047_v34 = vpop.f32.mrf.mxu1 }
 0x125   :  { %v2027_v48 = vadd.f32 %v2026_v33, %v2025_v32 }
 0x126   :  { %v2028_v35 = vpop.f32.mrf.mxu0  ;;  %v2048_v37 = vpop.f32.mrf.mxu1 }
 0x127   :  { %v1443_v50 = vadd.f32 %v2027_v48, %v1403_v30  ;;  %v2049_v51 = vadd.f32 %v2048_v37, %v2047_v34 }
 0x128   :  { %v2029_v38 = vpop.f32.mrf.mxu0  ;;  %v2050_v36 = vpop.f32.mrf.mxu1 }
 0x129   :  { %v1483_v55 = vadd.f32 %v2049_v51, %v1443_v50 }
 0x12a   :  { %v2051_v39 = vpop.f32.mrf.mxu1 }
 0x142   :  { %v2069_v40 = vpop.f32.mrf.mxu0 }
 0x144   :  { %v2070_v41 = vpop.f32.mrf.mxu0  ;;  %v2091_v42 = vpop.f32.mrf.mxu1 }
 0x145   :  { %v2071_v53 = vadd.f32 %v2070_v41, %v2069_v40 }
 0x146   :  { %v2072_v43 = vpop.f32.mrf.mxu0  ;;  %v2092_v44 = vpop.f32.mrf.mxu1 }
 0x147   :  { %v1523_v57 = vadd.f32 %v2071_v53, %v1483_v55  ;;  %v2093_v58 = vadd.f32 %v2092_v44, %v2091_v42 }
 0x148   :  { %v2073_v45 = vpop.f32.mrf.mxu0  ;;  %v2094_v46 = vpop.f32.mrf.mxu1 }
 0x149   :  { %v1563_v61 = vadd.f32 %v2093_v58, %v1523_v57 }
 0x14a   :  { %v2095_v47 = vpop.f32.mrf.mxu1 }
 0x150   :  { %v1642_v49 = vpop.f32.mrf.mxu1 }
 0x152   :  { %v2145_v52 = vpop.f32.mrf.mxu1 }
 0x154   :  { %v1645_v54 = vpop.f32.mrf.mxu1 }
 0x156   :  { %v2146_v56 = vpop.f32.mrf.mxu1 }
 0x162   :  { %v2113_v59 = vpop.f32.mrf.mxu0 }
 0x164   :  { %v2114_v60 = vpop.f32.mrf.mxu0 }
 0x165   :  { %v2115_v62 = vadd.f32 %v2114_v60, %v2113_v59 }
 0x166   :  { %v2116_v63 = vpop.f32.mrf.mxu0 }
 0x167   :  { %v1603_v0 = vadd.f32 %v2115_v62, %v1563_v61 }
 0x168   :  { %v2117_v1 = vpop.f32.mrf.mxu0 }
 0x169   :  { %v1643_v2 = vadd.f32 %v1642_v49, %v1603_v0 }
 0x16b   :  { %v1648_v3 = vmax.f32 %v1643_v2, 0.0 }
 0x16d   :  { %2174 = vmatmul.mubr.msk.f32.vlgmr.msra.gmra.mxu1 %vm1669_vm3, %v1648_v3 }
 0x22d   :  { %v1743_v5 = vpop.f32.mrf.mxu1 }
 0x22e   :  { %v1744_v6 = vadd.f32 %v1918_v4, %v1743_v5 }
 0x22f   :  { %v2175_v7 = vpop.f32.mrf.mxu1 }
 0x230   :  { %v1748_v8 = vsel %vm1747_vm4, %v1744_v6, -inf  ;;  %1760 = vst.msk [vmem:[%s2944_s6] sm:$0xff] %vm1747_vm4, %v1744_v6 }
 0x231   :  { %1749 = vmax.xlane.f32.xlu0 %v1748_v8 }
 0x2ba   :  { %v1750_v9 = vpop.xlane.xlu0 %1749 }
 0x2bb   :  { %v1751_v10 = vsub.f32 %v1744_v6, %v1750_v9 }
 0x2bd   :  { %v1752_v11 = vmul.f32 1.442695, %v1751_v10 }
 0x2bf   :  { %2325 = vpow2.f32 %v1752_v11 }
 0x2cc   :  { %v2326_v12 = vpop.eup %2325 }
 0x2cd   :  { %v1754_v13 = vsel %vm1747_vm4, %v2326_v12, 0.0 }
 0x2ce   :  { %1755 = vadd.xlane.f32.xlu0 %v1754_v13 }
 0x357   :  { %v1756_v14 = vpop.xlane.xlu0 %1755 }
 0x358   :  { %2327 = vrcp.f32 %v1756_v14 }
 0x365   :  { %v2328_v15 = vpop.eup %2327 }
 0x366   :  { %v1758_v16 = vmul.f32 %v2328_v15, %v2326_v12 }
 0x368   :  { %1759 = vst.msk [vmem:[%s2945_s5] sm:$0xff] %vm1747_vm4, %v1758_v16 }

</bundles_post_ra>
